<compile_context>
chip_gen: v7x
topology: tpu7x:2x2x1
jax: 0.10.0
libtpu: 0.0.40
codegen_flags: <defaults>
</compile_context>

<pallas_src>
import numpy as np
import jax
import jax.numpy as jnp
from jax.experimental import pallas as pl
from jax.experimental.pallas import tpu as pltpu

# Statistics dots feed an eigendecomposition -> full-f32 accuracy.
_PREC_STATS = jax.lax.Precision.HIGHEST
# At D << 128 the apply pass is DMA-bound and the MXU idles either way, so
# multi-pass f32 is free and keeps the demo bit-close to the f32 reference;
# for production-sized D (>=128) drop this to Precision.DEFAULT.
_PREC_APPLY = jax.lax.Precision.HIGHEST


def _round_up(a, b):
    return ((a + b - 1) // b) * b


def _vmem_limit_bytes():
    # Generation-aware scoped-VMEM budget (v5e/v6e: 128 MiB phys, v7x: 64 MiB).
    try:
        cap = int(pltpu.get_tpu_info().vmem_capacity_bytes)
        return int(min(cap * 3 // 4, 96 * 1024 * 1024))
    except Exception:
        return 32 * 1024 * 1024


# --------------------- Kernel 1: streaming label/group stats ----------------
def _stats_kernel(prevx_ref, x_ref, lab_ref, tim_ref,
                  psum_ref, pcnt_ref, pm2_ref, mean_ref,
                  xcnt_scr):
    i = pl.program_id(0)

    @pl.when(i == 0)
    def _init():
        psum_ref[...] = jnp.zeros_like(psum_ref)
        pcnt_ref[...] = jnp.zeros_like(pcnt_ref)
        pm2_ref[...] = jnp.zeros_like(pm2_ref)
        mean_ref[...] = jnp.zeros_like(mean_ref)
        xcnt_scr[...] = jnp.zeros_like(xcnt_scr)

    prevx = prevx_ref[...]                           # (tn, D) f32
    xt = x_ref[...]                                  # (tn, D) f32
    labs = lab_ref[...]                              # (1, tn) i32 (pads = -1)
    tims = tim_ref[...]                              # (1, tn) i32 (pads = -1)

    num_label = psum_ref.shape[0]
    num_tl = mean_ref.shape[0]
    tn = prevx.shape[0]

    # lane-dense per-label one-hot built in-kernel (no (N,1) mask DMAs)
    lab_iota = jax.lax.broadcasted_iota(jnp.int32, (num_label, tn), 0)
    oh_lab = (lab_iota == labs).astype(jnp.float32)              # (L, tn)

    psum_ref[...] += jnp.dot(oh_lab, prevx, precision=_PREC_STATS,
                             preferred_element_type=jnp.float32)
    pcnt_ref[...] += jnp.sum(oh_lab, axis=1, keepdims=True)

    # per-label second moment: pm2[y] += sum_u oh[y,u] * x_u x_u^T
    masked_t = oh_lab[:, None, :] * prevx.T[None, :, :]          # (L, D, tn)
    prevx_b = jnp.broadcast_to(prevx[None, :, :], (num_label,) + prevx.shape)
    pm2_ref[...] += jax.lax.dot_general(                          # 'ldu,lue->lde'
        masked_t, prevx_b,
        dimension_numbers=(((2,), (1,)), ((0,), (0,))),
        precision=_PREC_STATS, preferred_element_type=jnp.float32)

    # per-(time,label) sums of x (train_mean numerator); pads give code < 0
    code = tims * num_label + labs                                # (1, tn)
    tl_iota = jax.lax.broadcasted_iota(jnp.int32, (num_tl, tn), 0)
    oh_tl = (tl_iota == code).astype(jnp.float32)                 # (T*L, tn)
    mean_ref[...] += jnp.dot(oh_tl, xt, precision=_PREC_STATS,
                             preferred_element_type=jnp.float32)
    xcnt_scr[...] += jnp.sum(oh_tl, axis=1, keepdims=True)

    # fused normalization (torch: mean / max(1, cnt))
    @pl.when(i == pl.num_programs(0) - 1)
    def _finalize():
        mean_ref[...] = mean_ref[...] / jnp.maximum(xcnt_scr[...], 1.0)


def _stats_call(prev_x_pad, x_pad, labels_row, times_row,
                num_label, num_tl, tile_n, vmem_limit):
    n_pad, d = prev_x_pad.shape
    n_tiles = n_pad // tile_n
    return pl.pallas_call(
        _stats_kernel,
        out_shape=(jax.ShapeDtypeStruct((num_label, d), jnp.float32),
                   jax.ShapeDtypeStruct((num_label, 1), jnp.float32),
                   jax.ShapeDtypeStruct((num_label, d, d), jnp.float32),
                   jax.ShapeDtypeStruct((num_tl, d), jnp.float32)),
        grid_spec=pltpu.PrefetchScalarGridSpec(
            num_scalar_prefetch=0,
            grid=(n_tiles,),
            in_specs=[pl.BlockSpec((tile_n, d), lambda i: (i, 0)),
                      pl.BlockSpec((tile_n, d), lambda i: (i, 0)),
                      pl.BlockSpec((1, tile_n), lambda i: (0, i)),
                      pl.BlockSpec((1, tile_n), lambda i: (0, i))],
            out_specs=(pl.BlockSpec((num_label, d), lambda i: (0, 0)),
                       pl.BlockSpec((num_label, 1), lambda i: (0, 0)),
                       pl.BlockSpec((num_label, d, d), lambda i: (0, 0, 0)),
                       pl.BlockSpec((num_tl, d), lambda i: (0, 0))),
            scratch_shapes=[pltpu.VMEM((num_tl, 1), jnp.float32)]),
        compiler_params=pltpu.CompilerParams(
            dimension_semantics=("arbitrary",),      # N is a reduction axis
            vmem_limit_bytes=vmem_limit),
    )(prev_x_pad, x_pad, labels_row, times_row)


# --------------------- Kernel 2: grouped transform application --------------
def _apply_kernel(gid_ref, x_ref, a_ref, b_ref, mu_ref, out_ref):
    # out = ((x - mu) @ B^T) @ A^T + mu for the single group owning this tile.
    del gid_ref                                   # consumed by the index_maps
    mu = mu_ref[0]                                # (1, D)
    xc = x_ref[...] - mu                          # (tile_n, D)
    h = jax.lax.dot_general(xc, b_ref[0], (((1,), (1,)), ((), ())),
                            precision=_PREC_APPLY,
                            preferred_element_type=jnp.float32)
    y = jax.lax.dot_general(h, a_ref[0], (((1,), (1,)), ((), ())),
                            precision=_PREC_APPLY,
                            preferred_element_type=jnp.float32)
    out_ref[...] = (y + mu).astype(out_ref.dtype)


def _apply_call(tile_gid, x_sorted, a_full, b_full, mu_full, tile_n, vmem_limit):
    n_sorted, d = x_sorted.shape
    n_tiles = n_sorted // tile_n
    return pl.pallas_call(
        _apply_kernel,
        out_shape=jax.ShapeDtypeStruct((n_sorted, d), jnp.float32),
        grid_spec=pltpu.PrefetchScalarGridSpec(
            num_scalar_prefetch=1,                # per-tile group id -> SMEM
            grid=(n_tiles,),
            in_specs=[pl.BlockSpec((tile_n, d), lambda i, gid: (i, 0)),
                      pl.BlockSpec((1, d, d), lambda i, gid: (gid[i], 0, 0)),
                      pl.BlockSpec((1, d, d), lambda i, gid: (gid[i], 0, 0)),
                      pl.BlockSpec((1, 1, d), lambda i, gid: (gid[i], 0, 0))],
            out_specs=pl.BlockSpec((tile_n, d), lambda i, gid: (i, 0))),
        compiler_params=pltpu.CompilerParams(
            dimension_semantics=("parallel",),    # each row touched exactly once
            vmem_limit_bytes=vmem_limit),
    )(tile_gid, x_sorted, a_full, b_full, mu_full)


# ------------------------------- PNY module ---------------------------------
class PNYPallas:
    def __init__(self, labels, times, num_time, num_label, split,
                 relative_connectivity, stats_tile_rows=512, apply_tile_rows=512):
        labels_np = np.asarray(labels, np.int32)
        times_np = np.asarray(times, np.int32)
        self.num_time = int(num_time)
        self.num_label = int(num_label)
        self.split = int(split)
        self.P = jnp.asarray(relative_connectivity, jnp.float32)
        self.N = int(labels_np.shape[0])
        L, T, S = self.num_label, self.num_time, self.split
        G = L * S
        self._num_groups = G
        self._vmem_limit = _vmem_limit_bytes()

        # --- stats kernel static prep: lane-dense (1, Np) int32 id rows -----
        stile = max(128, (int(stats_tile_rows) // 128) * 128)
        n8 = _round_up(self.N, 8)
        if n8 <= stile:                      # single tile: block == full dims
            self._stats_tile = n8
            self._stats_rows = n8
        else:                                # tiled: tile is a multiple of 128
            self._stats_tile = stile
            self._stats_rows = _round_up(self.N, stile)
        lab_row = np.full((1, self._stats_rows), -1, np.int32)
        tim_row = np.full((1, self._stats_rows), -1, np.int32)
        lab_row[0, :self.N] = labels_np
        tim_row[0, :self.N] = times_np
        self._labels_row = jnp.asarray(lab_row)
        self._times_row = jnp.asarray(tim_row)

        # --- grouped-apply static prep (labels/times are module constants) --
        # group id: y*split + t for train rows (t < split); G = identity group.
        gids = np.where(times_np < S, labels_np * S + times_np, G).astype(np.int64)
        tile = max(8, (int(apply_tile_rows) // 8) * 8)
        tile = min(tile, max(8, _round_up(self.N, 8)))
        perm_chunks, tile_gid = [], []
        for g in range(G + 1):
            idx = np.nonzero(gids == g)[0]
            if idx.size == 0:
                continue
            padded = _round_up(int(idx.size), tile)
            chunk = np.full(padded, self.N, np.int64)   # pads -> appended zero row
            chunk[:idx.size] = idx
            perm_chunks.append(chunk)
            tile_gid.extend([g] * (padded // tile))
        perm = np.concatenate(perm_chunks)
        pos = np.zeros(self.N, np.int64)
        valid = perm < self.N
        pos[perm[valid]] = np.nonzero(valid)[0]
        self._apply_tile = tile
        self._perm = jnp.asarray(perm, jnp.int32)
        self._pos = jnp.asarray(pos, jnp.int32)
        self._tile_gid = jnp.asarray(np.asarray(tile_gid, np.int32))

    def forward(self, prev_x, x):
        L, T, S = self.num_label, self.num_time, self.split
        N, D = x.shape
        assert N == self.N, "labels/times were built for a different N"
        prev_x = prev_x.astype(jnp.float32)
        x = x.astype(jnp.float32)

        # --- Kernel 1: one streaming pass -> label stats + (t,l) means ------
        rows = self._stats_rows
        if rows > N:
            pad = ((0, rows - N), (0, 0))
            prev_xp, xp = jnp.pad(prev_x, pad), jnp.pad(x, pad)
        else:
            prev_xp, xp = prev_x, x
        psum, pcnt, pm2, mean_tl = _stats_call(
            prev_xp, xp, self._labels_row, self._times_row,
            L, T * L, self._stats_tile, self._vmem_limit)

        # --- tiny XLA glue: covariance finalize (guarded) + mixing ----------
        mu_lab = psum / jnp.maximum(pcnt, 1.0)                       # (L, D)
        outer = mu_lab[:, :, None] * mu_lab[:, None, :]              # (L, D, D)
        prev_cov = (pm2 - pcnt[:, :, None] * outer) \
            / jnp.maximum(pcnt - 1.0, 1.0)[:, :, None]               # torch.cov (guarded)

        t1 = jnp.arange(T)[:, None]
        t2 = jnp.arange(T)[None, :]
        far = jnp.abs(t2 - t1) > jnp.minimum(T - 1 - t1, t1)
        fact2 = jnp.where(far, 2.0, 1.0)                             # (T, T)
        fact4 = jnp.where(far, 4.0, 1.0)
        denom = jnp.sum(self.P * fact2[None, :, None, :], axis=(2, 3)) ** 2   # (L, T)
        w = jnp.sum(self.P * fact4[None, :, None, :], axis=3) / denom[:, :, None]
        cur_cov = jnp.sum(w[:, :, :, None, None] * prev_cov[None, None],
                          axis=2)                                    # (L, T, D, D)

        # --- eigendecompositions (glue) --------------------------------------
        # TODO(synk): torch.linalg.eigh has no Pallas equivalent; jnp.linalg.eigh.
        eps = 1e-12
        l_max, q_max = jnp.linalg.eigh(cur_cov[:, T - 1])            # (L,D),(L,D,D)
        l_max = jnp.maximum(l_max, eps)
        a_fac = q_max * jnp.sqrt(l_max)[:, None, :]                  # Qmax @ diag(sqrt)
        l_t, q_t = jnp.linalg.eigh(cur_cov[:, :S].reshape(L * S, D, D))
        l_t = jnp.maximum(l_t, eps)
        b_fac = jnp.swapaxes(q_t, 1, 2) / jnp.sqrt(l_t)[:, :, None]  # diag(1/sqrt)@Q^T
        a_rep = jnp.repeat(a_fac, S, axis=0)                         # group g = y*S + t

        eye = jnp.eye(D, dtype=jnp.float32)
        a_full = jnp.concatenate([a_rep, eye[None]], axis=0)         # (G+1, D, D)
        b_full = jnp.concatenate([b_fac, eye[None]], axis=0)
        mean_r = mean_tl.reshape(T, L, D)
        mu_yt = jnp.transpose(mean_r, (1, 0, 2))[:, :S].reshape(L * S, D)
        mu_full = jnp.concatenate([mu_yt, jnp.zeros((1, D), jnp.float32)],
                                  axis=0)[:, None, :]                # (G+1, 1, D)

        # --- Kernel 2: grouped transform (each row processed once) ----------
        x_aug = jnp.concatenate([x, jnp.zeros((1, D), jnp.float32)], axis=0)
        x_sorted = jnp.take(x_aug, self._perm, axis=0)
        out_sorted = _apply_call(self._tile_gid, x_sorted, a_full, b_full,
                                 mu_full, self._apply_tile, self._vmem_limit)
        return jnp.take(out_sorted, self._pos, axis=0)


# ------------------------- plain reference (for check) ----------------------
def reference_forward(prev_x, x, labels, times, P, L, T, split):
    prev_x = np.asarray(prev_x, np.float32)
    x = np.asarray(x, np.float32)
    labels = np.asarray(labels)
    times = np.asarray(times)
    P = np.asarray(P, np.float32)
    N, D = x.shape

    prev_cov = np.zeros((L, D, D), np.float32)
    for y in range(L):
        sub = prev_x[labels == y]
        c = sub - sub.mean(axis=0, keepdims=True)
        prev_cov[y] = c.T @ c / (sub.shape[0] - 1)

    cur = np.zeros((L, T, D, D), np.float32)
    for y1 in range(L):
        for t1 in range(T):
            denom = 0.0
            for y2 in range(L):
                for t2 in range(T):
                    denom += P[y1, t1, y2, t2] * (2 if abs(t2 - t1) > min(T - 1 - t1, t1) else 1)
            denom = denom * denom
            for y2 in range(L):
                temp = 0.0
                for t2 in range(T):
                    temp += P[y1, t1, y2, t2] * (4 if abs(t2 - t1) > min(T - 1 - t1, t1) else 1)
                cur[y1, t1] += (temp / denom) * prev_cov[y2]

    Lm_all, Qm_all = jnp.linalg.eigh(jnp.asarray(cur[:, T - 1]))
    Lt_all, Qt_all = jnp.linalg.eigh(jnp.asarray(cur[:, :split].reshape(L * split, D, D)))
    Lm_all, Qm_all = np.asarray(Lm_all), np.asarray(Qm_all)
    Lt_all, Qt_all = np.asarray(Lt_all), np.asarray(Qt_all)

    cov_transform = np.zeros((L, T, D, D), np.float32)
    for y1 in range(L):
        Lm_sq = np.diag(np.sqrt(Lm_all[y1]))
        for t1 in range(split):
            Le = Lt_all[y1 * split + t1]
            Qe = Qt_all[y1 * split + t1]
            inv = np.diag(1.0 / np.sqrt(Le))
            cov_transform[y1, t1] = Qm_all[y1] @ Lm_sq @ inv @ Qe.T

    train_mean = np.zeros((T, L, D), np.float32)
    train_cnt = np.zeros((T, L), np.float32)
    for u in range(N):
        train_cnt[times[u], labels[u]] += 1
        train_mean[times[u], labels[u]] += x[u]
    for t in range(T):
        for l in range(L):
            train_mean[t, l] /= max(1.0, train_cnt[t, l])

    clone = x.copy()
    for u in range(N):
        t, y = int(times[u]), int(labels[u])
        if t < split:
            clone[u] = cov_transform[y, t] @ (x[u] - train_mean[t, y]) + train_mean[t, y]
    return clone


if __name__ == "__main__":
    key = jax.random.PRNGKey(0)
    N, D = 32, 8
    L, T, split = 2, 4, 2

    k1, k2, k3 = jax.random.split(key, 3)
    prev_x = jax.random.normal(k1, (N, D), jnp.float32)
    x = jax.random.normal(k2, (N, D), jnp.float32)
    labels = jnp.arange(N, dtype=jnp.int32) % L                 # every label populated
    times = (jnp.arange(N, dtype=jnp.int32) // L) % T           # every (t, l) populated
    P = jax.random.uniform(k3, (L, T, L, T), jnp.float32, minval=0.5, maxval=1.5)

    model = PNYPallas(labels, times, T, L, split, P)
    out = model.forward(prev_x, x)
    out = jax.block_until_ready(out)

    ref = reference_forward(prev_x, x, labels, times, P, L, T, split)
    np.testing.assert_allclose(np.asarray(out), ref, rtol=2e-2, atol=2e-2)
    print("KERNEL_OK")
</pallas_src>

<mosaic_0001>
module attributes {stable_mosaic.version = 11 : i64} {
  func.func @_stats_kernel(%arg0: i32, %arg1: memref<32x8xf32, #tpu.memory_space<vmem>>, %arg2: memref<32x8xf32, #tpu.memory_space<vmem>>, %arg3: memref<1x32xi32, #tpu.memory_space<vmem>>, %arg4: memref<1x32xi32, #tpu.memory_space<vmem>>, %arg5: memref<2x8xf32, #tpu.memory_space<vmem>>, %arg6: memref<2x1xf32, #tpu.memory_space<vmem>>, %arg7: memref<2x8x8xf32, #tpu.memory_space<vmem>>, %arg8: memref<8x8xf32, #tpu.memory_space<vmem>>, %arg9: memref<8x1xf32, #tpu.memory_space<vmem>>) attributes {dimension_semantics = [#tpu.dimension_semantics<arbitrary>], iteration_bounds = array<i64: 1>, scalar_prefetch = 0 : i64, scratch_operands = 1 : i64, tpu.core_type = #tpu.core_type<tc>, window_params = [{transform_indices = @transform_0, window_bounds = array<i64: 32, 8>}, {transform_indices = @transform_1, window_bounds = array<i64: 32, 8>}, {transform_indices = @transform_2, window_bounds = array<i64: 1, 32>}, {transform_indices = @transform_3, window_bounds = array<i64: 1, 32>}, {pipeline_mode = #tpu.pipeline_mode<synchronous>, transform_indices = @transform_4, window_bounds = array<i64: 2, 8>}, {pipeline_mode = #tpu.pipeline_mode<synchronous>, transform_indices = @transform_5, window_bounds = array<i64: 2, 1>}, {pipeline_mode = #tpu.pipeline_mode<synchronous>, transform_indices = @transform_6, window_bounds = array<i64: 2, 8, 8>}, {pipeline_mode = #tpu.pipeline_mode<synchronous>, transform_indices = @transform_7, window_bounds = array<i64: 8, 8>}]} {
    %c0_i32 = arith.constant 0 : i32
    %0 = arith.cmpi eq, %arg0, %c0_i32 : i32
    %1 = arith.extui %0 : i1 to i32
    %c0_i32_0 = arith.constant 0 : i32
    %2 = arith.cmpi ne, %1, %c0_i32_0 : i32
    scf.if %2 {
      %cst_36 = arith.constant 0.000000e+00 : f32
      %54 = vector.broadcast %cst_36 : f32 to vector<2x8xf32>
      %c0_37 = arith.constant 0 : index
      %c0_38 = arith.constant 0 : index
      %55 = vector.load %arg5[%c0_37, %c0_38] : memref<2x8xf32, #tpu.memory_space<vmem>>, vector<2x8xf32>
      tpu.vector_store %arg5[%c0_37, %c0_38], %54 {strides = array<i32>} : memref<2x8xf32, #tpu.memory_space<vmem>>, vector<2x8xf32>,
      %cst_39 = arith.constant 0.000000e+00 : f32
      %56 = vector.broadcast %cst_39 : f32 to vector<2x1xf32>
      %c0_40 = arith.constant 0 : index
      %c0_41 = arith.constant 0 : index
      %57 = vector.load %arg6[%c0_40, %c0_41] : memref<2x1xf32, #tpu.memory_space<vmem>>, vector<2x1xf32>
      tpu.vector_store %arg6[%c0_40, %c0_41], %56 {strides = array<i32>} : memref<2x1xf32, #tpu.memory_space<vmem>>, vector<2x1xf32>,
      %cst_42 = arith.constant 0.000000e+00 : f32
      %58 = vector.broadcast %cst_42 : f32 to vector<2x8x8xf32>
      %c0_43 = arith.constant 0 : index
      %c0_44 = arith.constant 0 : index
      %c0_45 = arith.constant 0 : index
      %59 = vector.load %arg7[%c0_43, %c0_44, %c0_45] : memref<2x8x8xf32, #tpu.memory_space<vmem>>, vector<2x8x8xf32>
      tpu.vector_store %arg7[%c0_43, %c0_44, %c0_45], %58 {strides = array<i32>} : memref<2x8x8xf32, #tpu.memory_space<vmem>>, vector<2x8x8xf32>,
      %cst_46 = arith.constant 0.000000e+00 : f32
      %60 = vector.broadcast %cst_46 : f32 to vector<8x8xf32>
      %c0_47 = arith.constant 0 : index
      %c0_48 = arith.constant 0 : index
      %61 = vector.load %arg8[%c0_47, %c0_48] : memref<8x8xf32, #tpu.memory_space<vmem>>, vector<8x8xf32>
      tpu.vector_store %arg8[%c0_47, %c0_48], %60 {strides = array<i32>} : memref<8x8xf32, #tpu.memory_space<vmem>>, vector<8x8xf32>,
      %cst_49 = arith.constant 0.000000e+00 : f32
      %62 = vector.broadcast %cst_49 : f32 to vector<8x1xf32>
      %c0_50 = arith.constant 0 : index
      %c0_51 = arith.constant 0 : index
      %63 = vector.load %arg9[%c0_50, %c0_51] : memref<8x1xf32, #tpu.memory_space<vmem>>, vector<8x1xf32>
      tpu.vector_store %arg9[%c0_50, %c0_51], %62 {strides = array<i32>} : memref<8x1xf32, #tpu.memory_space<vmem>>, vector<8x1xf32>,
    } else {
    }
    %c0 = arith.constant 0 : index
    %c0_1 = arith.constant 0 : index
    %3 = vector.load %arg1[%c0, %c0_1] : memref<32x8xf32, #tpu.memory_space<vmem>>, vector<32x8xf32>
    %c0_2 = arith.constant 0 : index
    %c0_3 = arith.constant 0 : index
    %4 = vector.load %arg2[%c0_2, %c0_3] : memref<32x8xf32, #tpu.memory_space<vmem>>, vector<32x8xf32>
    %c0_4 = arith.constant 0 : index
    %c0_5 = arith.constant 0 : index
    %5 = vector.load %arg3[%c0_4, %c0_5] : memref<1x32xi32, #tpu.memory_space<vmem>>, vector<1x32xi32>
    %c0_6 = arith.constant 0 : index
    %c0_7 = arith.constant 0 : index
    %6 = vector.load %arg4[%c0_6, %c0_7] : memref<1x32xi32, #tpu.memory_space<vmem>>, vector<1x32xi32>
    %7 = tpu.iota {dimensions = array<i32: 0>} : vector<2x32xi32>
    %8 = vector.broadcast %5 : vector<1x32xi32> to vector<2x32xi32>
    %9 = arith.cmpi eq, %7, %8 : vector<2x32xi32>
    %10 = arith.extui %9 : vector<2x32xi1> to vector<2x32xi32>
    %11 = arith.sitofp %10 : vector<2x32xi32> to vector<2x32xf32>
    %c0_8 = arith.constant 0 : index
    %c0_9 = arith.constant 0 : index
    %12 = vector.load %arg5[%c0_8, %c0_9] : memref<2x8xf32, #tpu.memory_space<vmem>>, vector<2x8xf32>
    %cst = arith.constant dense<0.000000e+00> : vector<2x8xf32>
    %13 = tpu.matmul %11, %3, %cst {dimension_numbers = #tpu.dot_dimension_numbers<[1], [0], [0], [1], [0, 0, 1, 1], [], []>, precision = #tpu.contract_precision<fp32>} : vector<2x32xf32>, vector<32x8xf32>, vector<2x8xf32> -> vector<2x8xf32>
    %14 = arith.addf %12, %13 : vector<2x8xf32>
    %c0_10 = arith.constant 0 : index
    %c0_11 = arith.constant 0 : index
    %15 = vector.load %arg5[%c0_10, %c0_11] : memref<2x8xf32, #tpu.memory_space<vmem>>, vector<2x8xf32>
    tpu.vector_store %arg5[%c0_10, %c0_11], %14 {strides = array<i32>} : memref<2x8xf32, #tpu.memory_space<vmem>>, vector<2x8xf32>,
    %c0_12 = arith.constant 0 : index
    %c0_13 = arith.constant 0 : index
    %16 = vector.load %arg6[%c0_12, %c0_13] : memref<2x1xf32, #tpu.memory_space<vmem>>, vector<2x1xf32>
    %cst_14 = arith.constant dense<0.000000e+00> : vector<2xf32>
    %17 = vector.multi_reduction <add>, %11, %cst_14 [1] : vector<2x32xf32> to vector<2xf32>
    %18 = vector.shape_cast %17 : vector<2xf32> to vector<2x1xf32>
    %19 = arith.addf %16, %18 : vector<2x1xf32>
    %c0_15 = arith.constant 0 : index
    %c0_16 = arith.constant 0 : index
    %20 = vector.load %arg6[%c0_15, %c0_16] : memref<2x1xf32, #tpu.memory_space<vmem>>, vector<2x1xf32>
    tpu.vector_store %arg6[%c0_15, %c0_16], %19 {strides = array<i32>} : memref<2x1xf32, #tpu.memory_space<vmem>>, vector<2x1xf32>,
    %21 = vector.shape_cast %11 : vector<2x32xf32> to vector<2x1x32xf32>
    %22 = tpu.transpose %3, [1, 0] : vector<32x8xf32> -> vector<8x32xf32>
    %23 = vector.shape_cast %22 : vector<8x32xf32> to vector<1x8x32xf32>
    %24 = vector.broadcast %21 : vector<2x1x32xf32> to vector<2x8x32xf32>
    %25 = vector.broadcast %23 : vector<1x8x32xf32> to vector<2x8x32xf32>
    %26 = arith.mulf %24, %25 : vector<2x8x32xf32>
    %27 = vector.shape_cast %3 : vector<32x8xf32> to vector<1x32x8xf32>
    %28 = vector.shape_cast %27 : vector<1x32x8xf32> to vector<1x32x8xf32>
    %29 = vector.broadcast %28 : vector<1x32x8xf32> to vector<2x32x8xf32>
    %c0_17 = arith.constant 0 : index
    %c0_18 = arith.constant 0 : index
    %c0_19 = arith.constant 0 : index
    %30 = vector.load %arg7[%c0_17, %c0_18, %c0_19] : memref<2x8x8xf32, #tpu.memory_space<vmem>>, vector<2x8x8xf32>
    %cst_20 = arith.constant dense<0.000000e+00> : vector<2x8x8xf32>
    %31 = tpu.matmul %26, %29, %cst_20 {dimension_numbers = #tpu.dot_dimension_numbers<[2], [1], [1], [2], [0, 0, 0, 1, 1, 2], [0], [0]>, precision = #tpu.contract_precision<fp32>} : vector<2x8x32xf32>, vector<2x32x8xf32>, vector<2x8x8xf32> -> vector<2x8x8xf32>
    %32 = arith.addf %30, %31 : vector<2x8x8xf32>
    %c0_21 = arith.constant 0 : index
    %c0_22 = arith.constant 0 : index
    %c0_23 = arith.constant 0 : index
    %33 = vector.load %arg7[%c0_21, %c0_22, %c0_23] : memref<2x8x8xf32, #tpu.memory_space<vmem>>, vector<2x8x8xf32>
    tpu.vector_store %arg7[%c0_21, %c0_22, %c0_23], %32 {strides = array<i32>} : memref<2x8x8xf32, #tpu.memory_space<vmem>>, vector<2x8x8xf32>,
    %c2_i32 = arith.constant 2 : i32
    %34 = vector.broadcast %c2_i32 : i32 to vector<1x32xi32>
    %35 = arith.muli %6, %34 : vector<1x32xi32>
    %36 = arith.addi %35, %5 : vector<1x32xi32>
    %37 = tpu.iota {dimensions = array<i32: 0>} : vector<8x32xi32>
    %38 = vector.broadcast %36 : vector<1x32xi32> to vector<8x32xi32>
    %39 = arith.cmpi eq, %37, %38 : vector<8x32xi32>
    %40 = arith.extui %39 : vector<8x32xi1> to vector<8x32xi32>
    %41 = arith.sitofp %40 : vector<8x32xi32> to vector<8x32xf32>
    %c0_24 = arith.constant 0 : index
    %c0_25 = arith.constant 0 : index
    %42 = vector.load %arg8[%c0_24, %c0_25] : memref<8x8xf32, #tpu.memory_space<vmem>>, vector<8x8xf32>
    %cst_26 = arith.constant dense<0.000000e+00> : vector<8x8xf32>
    %43 = tpu.matmul %41, %4, %cst_26 {dimension_numbers = #tpu.dot_dimension_numbers<[1], [0], [0], [1], [0, 0, 1, 1], [], []>, precision = #tpu.contract_precision<fp32>} : vector<8x32xf32>, vector<32x8xf32>, vector<8x8xf32> -> vector<8x8xf32>
    %44 = arith.addf %42, %43 : vector<8x8xf32>
    %c0_27 = arith.constant 0 : index
    %c0_28 = arith.constant 0 : index
    %45 = vector.load %arg8[%c0_27, %c0_28] : memref<8x8xf32, #tpu.memory_space<vmem>>, vector<8x8xf32>
    tpu.vector_store %arg8[%c0_27, %c0_28], %44 {strides = array<i32>} : memref<8x8xf32, #tpu.memory_space<vmem>>, vector<8x8xf32>,
    %c0_29 = arith.constant 0 : index
    %c0_30 = arith.constant 0 : index
    %46 = vector.load %arg9[%c0_29, %c0_30] : memref<8x1xf32, #tpu.memory_space<vmem>>, vector<8x1xf32>
    %cst_31 = arith.constant dense<0.000000e+00> : vector<8xf32>
    %47 = vector.multi_reduction <add>, %41, %cst_31 [1] : vector<8x32xf32> to vector<8xf32>
    %48 = vector.shape_cast %47 : vector<8xf32> to vector<8x1xf32>
    %49 = arith.addf %46, %48 : vector<8x1xf32>
    %c0_32 = arith.constant 0 : index
    %c0_33 = arith.constant 0 : index
    %50 = vector.load %arg9[%c0_32, %c0_33] : memref<8x1xf32, #tpu.memory_space<vmem>>, vector<8x1xf32>
    tpu.vector_store %arg9[%c0_32, %c0_33], %49 {strides = array<i32>} : memref<8x1xf32, #tpu.memory_space<vmem>>, vector<8x1xf32>,
    %c0_i32_34 = arith.constant 0 : i32
    %51 = arith.cmpi eq, %arg0, %c0_i32_34 : i32
    %52 = arith.extui %51 : i1 to i32
    %c0_i32_35 = arith.constant 0 : i32
    %53 = arith.cmpi ne, %52, %c0_i32_35 : i32
    scf.if %53 {
      %c0_36 = arith.constant 0 : index
      %c0_37 = arith.constant 0 : index
      %54 = vector.load %arg8[%c0_36, %c0_37] : memref<8x8xf32, #tpu.memory_space<vmem>>, vector<8x8xf32>
      %c0_38 = arith.constant 0 : index
      %c0_39 = arith.constant 0 : index
      %55 = vector.load %arg9[%c0_38, %c0_39] : memref<8x1xf32, #tpu.memory_space<vmem>>, vector<8x1xf32>
      %cst_40 = arith.constant 1.000000e+00 : f32
      %56 = vector.broadcast %cst_40 : f32 to vector<8x1xf32>
      %57 = arith.maximumf %55, %56 : vector<8x1xf32>
      %58 = vector.broadcast %57 : vector<8x1xf32> to vector<8x8xf32>
      %59 = arith.divf %54, %58 : vector<8x8xf32>
      %c0_41 = arith.constant 0 : index
      %c0_42 = arith.constant 0 : index
      %60 = vector.load %arg8[%c0_41, %c0_42] : memref<8x8xf32, #tpu.memory_space<vmem>>, vector<8x8xf32>
      tpu.vector_store %arg8[%c0_41, %c0_42], %59 {strides = array<i32>} : memref<8x8xf32, #tpu.memory_space<vmem>>, vector<8x8xf32>,
    } else {
    }
    return
  }
  func.func @transform_0(%arg0: i32) -> (i32, i32) {
    %c0_i32 = arith.constant 0 : i32
    %c0_i32_0 = arith.constant 0 : i32
    return %arg0, %c0_i32 : i32, i32
  }
  func.func @transform_1(%arg0: i32) -> (i32, i32) {
    %c0_i32 = arith.constant 0 : i32
    %c0_i32_0 = arith.constant 0 : i32
    return %arg0, %c0_i32 : i32, i32
  }
  func.func @transform_2(%arg0: i32) -> (i32, i32) {
    %c0_i32 = arith.constant 0 : i32
    %c0_i32_0 = arith.constant 0 : i32
    return %c0_i32, %arg0 : i32, i32
  }
  func.func @transform_3(%arg0: i32) -> (i32, i32) {
    %c0_i32 = arith.constant 0 : i32
    %c0_i32_0 = arith.constant 0 : i32
    return %c0_i32, %arg0 : i32, i32
  }
  func.func @transform_4(%arg0: i32) -> (i32, i32) {
    %c0_i32 = arith.constant 0 : i32
    %c0_i32_0 = arith.constant 0 : i32
    %c0_i32_1 = arith.constant 0 : i32
    return %c0_i32, %c0_i32_0 : i32, i32
  }
  func.func @transform_5(%arg0: i32) -> (i32, i32) {
    %c0_i32 = arith.constant 0 : i32
    %c0_i32_0 = arith.constant 0 : i32
    %c0_i32_1 = arith.constant 0 : i32
    return %c0_i32, %c0_i32_0 : i32, i32
  }
  func.func @transform_6(%arg0: i32) -> (i32, i32, i32) {
    %c0_i32 = arith.constant 0 : i32
    %c0_i32_0 = arith.constant 0 : i32
    %c0_i32_1 = arith.constant 0 : i32
    %c0_i32_2 = arith.constant 0 : i32
    return %c0_i32, %c0_i32_0, %c0_i32_1 : i32, i32, i32
  }
  func.func @transform_7(%arg0: i32) -> (i32, i32) {
    %c0_i32 = arith.constant 0 : i32
    %c0_i32_0 = arith.constant 0 : i32
    %c0_i32_1 = arith.constant 0 : i32
    return %c0_i32, %c0_i32_0 : i32, i32
  }
}

</mosaic_0001>

<bundles_post_ra>
// kernel: tpu_custom_call.1
= control target key start
LH: loop header
LB: loop body
LE: loop exit
PB: predicated region body
PF: predicated region fallthrough
CT: control target
= control target key end

     0   :  { %13 = vsyncpa [#allocation4], 0  ;;  %v47_v3 = vlaneseq  ;;  %v2794_v8 = vmov 0.0|0.0   ;;  %vm2795_vm0 = vmmov 0   ;;  %v2796_v10 = vmov 0.0   ;;  %s3229_s0 = inlined_call_operand.vmem [shape: f32[32,8], index: 0, kind: input, shape index: {}]   ;;  %s3230_s1 = inlined_call_operand.vmem [shape: f32[32,8], index: 1, kind: input, shape index: {}]   ;;  %s3231_s2 = inlined_call_operand.vmem [shape: s32[1,32], index: 2, kind: input, shape index: {}]   ;;  %s3232_s3 = inlined_call_operand.vmem [shape: s32[1,32], index: 3, kind: input, shape index: {}]   ;;  %s3233_s4 = inlined_call_operand.hbm [shape: f32[2,8], index: 4, kind: output, shape index: {0}]   ;;  %s3234_s5 = inlined_call_operand.vmem [shape: f32[2,1], index: 5, kind: output, shape index: {1}]   ;;  %s3235_s6 = inlined_call_operand.hbm [shape: f32[2,8,8], index: 6, kind: output, shape index: {2}]   ;;  %s3236_s7 = inlined_call_operand.hbm [shape: f32[8,8], index: 7, kind: output, shape index: {3}]  }
   0x1   :  { %v37_v0 = vld [vmem:[%s3229_s0] sm:$0xff]  ;;  %v38_v1 = vld [vmem:[%s3229_s0 + $0x8] sm:$0xff]  ;;  %v39_v2 = vld [vmem:[%s3229_s0 + $0x10] sm:$0xff]  ;;  %2566 = vmatprep.subr.bf16.mxu0 %v2794_v8  ;;  %2572 = vmatprep.subr.bf16.mxu1 %v2794_v8 }
   0x2   :  { %579 = vxpose.xlu0.b32.start [1/4] (short) (narrow) %v37_v0, 8  ;;  %v62_v4 = vand.u32 4294901760, %v37_v0  ;;  %v65_v5 = vand.u32 4294901760, %v38_v1  ;;  %v68_v6 = vand.u32 4294901760, %v39_v2  ;;  %v40_v7 = vld [vmem:[%s3229_s0 + $0x18] sm:$0xff]  ;;  %2310 = vmatprep.mubr.msk.f32.mxu0 %vm2795_vm0, %v2796_v10  ;;  %v48_v11 = vshrl.u32 %v47_v3, 7 }
   0x3   :  { %v71_v9 = vand.u32 4294901760, %v40_v7  ;;  %v45_v16 = vld [vmem:[%s3231_s2] sm:$0x1]  ;;  %2321 = vmatprep.mubr.msk.f32.mxu1 %vm2795_vm0, %v2796_v10 }
   0x4   :  { %v2860_v12 = vsub.f32 %v37_v0, %v62_v4  ;;  %v2862_v13 = vsub.f32 %v38_v1, %v65_v5  ;;  %v2864_v14 = vpack.c.bf16 %v65_v5, %v62_v4  ;;  %v2866_v15 = vsub.f32 %v39_v2, %v68_v6 }
   0x5   :  { %14 = vsyncpa [#allocation6], 0  ;;  %v2873_v17 = vsub.f32 %v40_v7, %v71_v9  ;;  %v2875_v18 = vsub.s32 0, %v48_v11  ;;  %v2797_v19 = vmov 1966171168   ;;  %v2877_v21 = vpack.c.bf16 %v71_v9, %v68_v6  ;;  %s2799_s19 = smov [#allocation3]  }
   0x6   :  { %v558_v20 = vunpack.c.l.s4 %v2797_v19  ;;  %580 = vxpose.xlu0.b32.cont [2/4] (short) (narrow) %v38_v1, 8  ;;  %2568 = vmatpush3.bf16.msra.mxu0 %v2864_v14  ;;  %v143_v22 = vand.u32 4294901760, %v2860_v12  ;;  %v150_v23 = vand.u32 4294901760, %v2862_v13  ;;  %v157_v24 = vand.u32 4294901760, %v2866_v15  ;;  %v46_v31 = vld [vmem:[%s3232_s3] sm:$0x1] }
   0x7   :  { %2569 = vmatprep.subr.bf16.mxu0 %v2794_v8  ;;  %v164_v25 = vand.u32 4294901760, %v2873_v17  ;;  %v52_v26 = vrot.slane %v45_v16, %v2875_v18  ;;  %vm57_vm1 = vcmask 261120   ;;  %v1606_v41 = vmul.u32 2, %v46_v31  ;;  %v3039_v19 = vld [vmem:[%s3230_s1 + $0x18] sm:$0xff]  ;;  %s2133_s20 = sshll.u32 %s2799_s19, 4  ;;  %s2134_s20 = int_to_ptr.vmem [resolvable:$true] %s2133_s20 }
   0x8   :  { %v559_v27 = vunpack.c.0.s8 %v558_v20  ;;  %v144_v28 = vsub.f32 %v2860_v12, %v143_v22  ;;  %v151_v29 = vsub.f32 %v2862_v13, %v150_v23  ;;  %v158_v30 = vsub.f32 %v2866_v15, %v157_v24  ;;  %s2724_s21 = scalar_lea.vmem %s2134_s20, 32  ;;  %p2729_p1 = scmp.lt.s32.totalorder %s2134_s20, %s2134_s20 }
   0x9   :  { %v165_v32 = vsub.f32 %v2873_v17, %v164_v25  ;;  %vm53_vm2 = vcmp.eq.s32.totalorder %v48_v11, %v52_v26  ;;  %v1607_v46 = vadd.s32 %v1606_v41, %v45_v16  ;;  %v2915_v53 = vpack.c.bf16 %v2862_v13, %v2860_v12  ;;  %v3011_v12 = vld [vmem:[%s3230_s1] sm:$0xff]  ;;  %v3016_v13 = vld [vmem:[%s3230_s1 + $0x8] sm:$0xff]  ;;  %p2725_p0 = scmp.ne.s32.totalorder %s2134_s20, %s2724_s21  ;;  %p2730_p2 = scmp.lt.s32.totalorder %s2724_s21, %s2724_s21 }
   0xa   :  { %v562_v33 = vsub.s32 %v559_v27, %v48_v11  ;;  %581 = vxpose.xlu0.b32.cont [3/4] (short) (narrow) %v39_v2, 8  ;;  %v145_v34 = vand.u32 4294901760, %v144_v28  ;;  %v152_v35 = vand.u32 4294901760, %v151_v29  ;;  %2571 = vmatpush3.bf16.msra.mxu0 %v2877_v21  ;;  %v159_v36 = vand.u32 4294901760, %v158_v30 }
   0xb   :  { %v2897_v37 = vsel %vm53_vm2, 1.0, %v2796_v10  ;;  %v166_v38 = vand.u32 4294901760, %v165_v32  ;;  %2578 = vmatprep.subr.bf16.mxu0 %v2794_v8  ;;  %v1611_v51 = vrot.slane %v1607_v46, %v2875_v18  ;;  %v2931_v58 = vpack.c.bf16 %v2873_v17, %v2866_v15  ;;  %p2731_p3 = por %p2730_p2, %p2729_p1 }
   0xc   :  { %v59_v39 = vsel %vm57_vm1, %v2897_v37, 0  ;;  %v563_v40 = vrot.slane %v2897_v37, %v562_v33  ;;  %v2903_v42 = vpack.c.bf16 %v152_v35, %v145_v34  ;;  %v2941_v59 = vpack.c.bf16 %v150_v23, %v143_v22 }
   0xd   :  { %v131_v43 = vsub.f32 %v59_v39, %v59_v39  ;;  %v2906_v47 = vpack.c.bf16 %v166_v38, %v159_v36  ;;  %vm1612_vm3 = vcmp.eq.s32.totalorder %v48_v11, %v1611_v51  ;;  %v2949_v60 = vpack.c.bf16 %v164_v25, %v157_v24  ;;  %p2732_p4 = pnand %p2731_p3, %p2725_p0 }
   0xe   :  { %v564_v44 = vcombine.high %v563_v40, %v563_v40  ;;  %v571_v45 = vrot.slane %v563_v40, %v562_v33  ;;  %582 = vxpose.xlu0.b32.end [4/4] (short) (narrow) %v40_v7, 8  ;;  %2574 = vmatpush3.bf16.msra.mxu1 %v2903_v42  ;;  %v2921_v56 = vsel %vm1612_vm3, 1.0, %v2796_v10  ;;  %vm35_vm4 = vcmask 7168  }
   0xf   :  { %v132_v48 = vand.u32 4294901760, %v131_v43  ;;  %2575 = vmatprep.subr.bf16.mxu1 %v2794_v8  ;;  %v2107_v57 = vsel %vm57_vm1, %v2921_v56, 0.0  ;;  %vm550_vm5 = vcmask 254976   ;;  %36 = vst.msk [vmem:[#allocation2] sm:$0xff] %vm35_vm4, %v2796_v10  ;;  %v2798_v62 = vmov 0  }
  0x10   :  { %v2909_v49 = vrot.slane %v564_v44, %v562_v33  ;;  %v614_v50 = vrot.slane %v571_v45, %v2875_v18  ;;  %2108 = vadd.xlane.f32.xlu1 %v2107_v57  ;;  %v551_v61 = vsel %vm550_vm5, %v2897_v37, 0.0  ;;  %vm27_vm6 = vcmask 58368  }
  0x11   :  { %v133_v52 = vsub.f32 %v131_v43, %v132_v48  ;;  %2720 = vset.pattern.permute.xlu1 %v2798_v62  ;;  %28 = vst.msk [vmem:[#allocation3] sm:$0x3] %vm27_vm6, %v2796_v10  ;;  %v1620_v15 = vand.u32 4294901760, %v3011_v12  ;;  %v1623_v17 = vand.u32 4294901760, %v3016_v13  ;;  %v1629_v25 = vand.u32 4294901760, %v3039_v19 }
  0x12   :  { %v618_v54 = vrot.slane %v2909_v49, %v2875_v18  ;;  %2577 = vmatpush3.bf16.msra.mxu1 %v2906_v47  ;;  %v3030_v18 = vld [vmem:[%s3230_s1 + $0x10] sm:$0xff]  ;;  %v1617_v44 = vsel %vm57_vm1, %v2921_v56, 0  ;;  %vm31_vm7 = vcmask 64512   ;;  %vm29_vm8 = vcmask 1024  }
  0x13   :  { %v134_v55 = vand.u32 4294901760, %v133_v52  ;;  %2584 = vmatprep.subr.bf16.mxu1 %v2794_v8  ;;  %v3046_v20 = vsub.f32 %v3011_v12, %v1620_v15  ;;  %v1626_v22 = vand.u32 4294901760, %v3030_v18  ;;  %v3055_v24 = vsub.f32 %v3016_v13, %v1623_v17  ;;  %32 = vst.msk [vmem:[#allocation5] sm:$0xff] %vm31_vm7, %v2796_v10  ;;  %33 = vst.msk [vmem:[#allocation5 + $0x8] sm:$0xff] %vm31_vm7, %v2796_v10 }
  0x14   :  { %v3074_v32 = vsub.f32 %v3039_v19, %v1629_v25  ;;  %34 = vst.msk [vmem:[#allocation7] sm:$0xff] %vm31_vm7, %v2796_v10 }
  0x15   :  { %2311 = vmatmul.mubr.f32.vlgmr.msra.gmra.mrb[0].mxu0 %v134_v55  ;;  %2322 = vmatmul.mubr.msk.f32.vlgmr.msra.gmra.mrb[0].mxu1 %vm57_vm1, %v2897_v37  ;;  %v1701_v27 = vand.u32 4294901760, %v3046_v20  ;;  %v3065_v28 = vsub.f32 %v3030_v18, %v1626_v22  ;;  %v1708_v31 = vand.u32 4294901760, %v3055_v24  ;;  %v2678_v52 = vpack.c.bf16 %v1629_v25, %v1626_v22  ;;  %30 = vst.msk [vmem:[%s3234_s5] sm:$0x3] %vm29_vm8, %v2796_v10 }
  0x16   :  { %2580 = vmatpush3.bf16.msra.mxu0 %v2915_v53  ;;  %2586 = vmatpush3.bf16.msra.mxu1 %v2864_v14  ;;  %v2106_v26 = vld [vmem:[#allocation2] sm:$0xff]  ;;  %v1722_v38 = vand.u32 4294901760, %v3074_v32 }
  0x17   :  { %2581 = vmatprep.subr.bf16.mxu0 %v2794_v8  ;;  %2587 = vmatprep.subr.bf16.mxu1 %v2794_v8  ;;  %v1702_v34 = vsub.f32 %v3046_v20, %v1701_v27  ;;  %v1709_v36 = vsub.f32 %v3055_v24, %v1708_v31  ;;  %v2690_v55 = vpack.c.bf16 %v3074_v32, %v3065_v28 }
  0x18   :  { %2332 = vmatprep.mubr.msk.f32.mxu0 %vm2795_vm0, %v2796_v10  ;;  %2343 = vmatprep.mubr.msk.f32.mxu1 %vm2795_vm0, %v2796_v10  ;;  %v2699_v57 = vpack.c.bf16 %v1708_v31, %v1701_v27 }
  0x19   :  { %v1703_v39 = vand.u32 4294901760, %v1702_v34  ;;  %v1710_v40 = vand.u32 4294901760, %v1709_v36 }
  0x1a   :  { %2583 = vmatpush3.bf16.msra.mxu0 %v2931_v58  ;;  %2589 = vmatpush3.bf16.msra.mxu1 %v2877_v21 }
  0x1b   :  { %2590 = vmatprep.subr.bf16.mxu0 %v2794_v8  ;;  %2596 = vmatprep.subr.bf16.mxu1 %v2794_v8  ;;  %v2681_v45 = vpack.c.bf16 %v1710_v40, %v1703_v39 }
  0x1d   :  { %2333 = vmatmul.mubr.f32.vlgmr.msra.gmra.mrb[2].mxu0 %v131_v43  ;;  %2344 = vmatmul.mubr.f32.vlgmr.msra.gmra.mrb[2].mxu1 %v132_v48  ;;  %v1689_v48 = vsub.f32 %v1617_v44, %v1617_v44 }
  0x1e   :  { %2592 = vmatpush3.bf16.msra.mxu0 %v2941_v59  ;;  %2598 = vmatpush3.bf16.msra.mxu1 %v2864_v14 }
  0x1f   :  { %2593 = vmatprep.subr.bf16.mxu0 %v2794_v8  ;;  %2599 = vmatprep.subr.bf16.mxu1 %v2794_v8  ;;  %v1690_v49 = vand.u32 4294901760, %v1689_v48 }
  0x20   :  { %2354 = vmatprep.mubr.msk.f32.mxu0 %vm2795_vm0, %v2796_v10  ;;  %2365 = vmatprep.mubr.msk.f32.mxu1 %vm2795_vm0, %v2796_v10 }
  0x21   :  { %v1691_v51 = vsub.f32 %v1689_v48, %v1690_v49 }
  0x22   :  { %2595 = vmatpush3.bf16.msra.mxu0 %v2949_v60  ;;  %2601 = vmatpush3.bf16.msra.mxu1 %v2877_v21 }
  0x23   :  { %2602 = vmatprep.subr.bf16.mxu0 %v2794_v8  ;;  %2608 = vmatprep.subr.bf16.mxu1 %v2794_v8 }
  0x25   :  { %2355 = vmatmul.mubr.msk.f32.vlgmr.msra.gmra.mrb[4].mxu0 %vm57_vm1, %v2897_v37  ;;  %2366 = vmatmul.mubr.msk.f32.vlgmr.msra.gmra.mrb[4].mxu1 %vm57_vm1, %v2897_v37  ;;  %v1715_v37 = vand.u32 4294901760, %v3065_v28 }
  0x26   :  { %2604 = vmatpush3.bf16.msra.mxu0 %v2864_v14  ;;  %2610 = vmatpush3.bf16.msra.mxu1 %v2903_v42 }
  0x27   :  { %2387 = vmatprep.mubr.msk.f32.mxu1 %vm2795_vm0, %v2796_v10  ;;  %2611 = vmatprep.subr.bf16.mxu1 %v2794_v8  ;;  %v1716_v41 = vsub.f32 %v3065_v28, %v1715_v37 }
  0x28   :  { %2605 = vmatprep.subr.bf16.mxu0 %v2794_v8  ;;  %2376 = vmatprep.mubr.msk.f32.mxu0 %vm2795_vm0, %v2796_v10 }
  0x29   :  { %v1717_v46 = vand.u32 4294901760, %v1716_v41 }
  0x2a   :  { %2607 = vmatpush3.bf16.msra.mxu0 %v2877_v21  ;;  %2613 = vmatpush3.bf16.msra.mxu1 %v2906_v47 }
  0x2b   :  { %2614 = vmatprep.subr.bf16.mxu0 %v2794_v8  ;;  %2620 = vmatprep.subr.bf16.mxu1 %v2794_v8 }
  0x37   :  { %2721 = vset.pattern.permute.xlu0 %v2798_v62 }
  0x3b   :  { %552 = vadd.xlane.f32.xlu0 %v551_v61 }
  0x82   :  { %v595_v63 = vpop.trf.xlu0 }
  0x83   :  { %v621_v0 = vmul.f32 %v614_v50, %v595_v63  ;;  %v622_v7 = vmul.f32 %v618_v54, %v595_v63  ;;  %v2675_v50 = vpack.c.bf16 %v1623_v17, %v1620_v15  ;;  %v2687_v54 = vpack.c.bf16 %v3055_v24, %v3046_v20 }
  0x85   :  { %v626_v1 = vsel %vm57_vm1, %v621_v0, 0  ;;  %v1114_v9 = vsel %vm57_vm1, %v622_v7, 0 }
  0x86   :  { %v697_v2 = vand.u32 4294901760, %v626_v1  ;;  %v3004_v11 = vand.u32 4294901760, %v1114_v9 }
  0x88   :  { %v698_v3 = vsub.f32 %v626_v1, %v697_v2  ;;  %2388 = vmatmul.mubr.f32.vlgmr.msra.gmra.mrb[6].mxu1 %v697_v2  ;;  %v3022_v16 = vsub.f32 %v1114_v9, %v3004_v11  ;;  %v56_v9 = vld [vmem:[#allocation3] sm:$0x3] }
  0x89   :  { %2622 = vmatpush3.bf16.msra.mxu1 %v2864_v14  ;;  %2409 = vmatprep.mubr.msk.f32.mxu1 %vm2795_vm0, %v2796_v10 }
  0x8a   :  { %2623 = vmatprep.subr.bf16.mxu1 %v2794_v8  ;;  %v699_v4 = vand.u32 4294901760, %v698_v3  ;;  %v1187_v23 = vand.u32 4294901760, %v3022_v16 }
  0x8c   :  { %v700_v5 = vsub.f32 %v698_v3, %v699_v4  ;;  %v1188_v30 = vsub.f32 %v3022_v16, %v1187_v23 }
  0x8d   :  { %2625 = vmatpush3.bf16.msra.mxu1 %v2877_v21 }
  0x8e   :  { %2632 = vmatprep.subr.bf16.mxu1 %v2794_v8  ;;  %v701_v6 = vand.u32 4294901760, %v700_v5  ;;  %v1189_v35 = vand.u32 4294901760, %v1188_v30 }
  0x90   :  { %2410 = vmatmul.mubr.f32.vlgmr.msra.gmra.mrb[8].mxu1 %v699_v4  ;;  %2377 = vmatmul.mubr.f32.vlgmr.msra.gmra.mrb[6].mxu0 %v701_v6 }
  0x91   :  { %2616 = vmatpush3.bf16.msra.mxu0 %v2915_v53  ;;  %2634 = vmatpush3.bf16.msra.mxu1 %v2864_v14 }
  0x92   :  { %2617 = vmatprep.subr.bf16.mxu0 %v2794_v8  ;;  %2635 = vmatprep.subr.bf16.mxu1 %v2794_v8 }
  0x93   :  { %2398 = vmatprep.mubr.msk.f32.mxu0 %vm2795_vm0, %v2796_v10  ;;  %2431 = vmatprep.mubr.msk.f32.mxu1 %vm2795_vm0, %v2796_v10 }
  0x95   :  { %2619 = vmatpush3.bf16.msra.mxu0 %v2931_v58  ;;  %2637 = vmatpush3.bf16.msra.mxu1 %v2877_v21 }
  0x96   :  { %2626 = vmatprep.subr.bf16.mxu0 %v2794_v8  ;;  %2644 = vmatprep.subr.bf16.mxu1 %v2794_v8 }
  0x98   :  { %2399 = vmatmul.mubr.f32.vlgmr.msra.gmra.mrb[8].mxu0 %v698_v3  ;;  %2432 = vmatmul.mubr.f32.vlgmr.msra.gmra.mrb[10].mxu1 %v697_v2 }
  0x99   :  { %2628 = vmatpush3.bf16.msra.mxu0 %v2941_v59  ;;  %2646 = vmatpush3.bf16.msra.mxu1 %v2903_v42  ;;  %v1723_v42 = vsub.f32 %v3074_v32, %v1722_v38 }
  0x9a   :  { %2629 = vmatprep.subr.bf16.mxu0 %v2794_v8  ;;  %2647 = vmatprep.subr.bf16.mxu1 %v2794_v8 }
  0x9b   :  { %2420 = vmatprep.mubr.msk.f32.mxu0 %vm2795_vm0, %v2796_v10  ;;  %2453 = vmatprep.mubr.msk.f32.mxu1 %vm2795_vm0, %v2796_v10 }
  0x9d   :  { %2631 = vmatpush3.bf16.msra.mxu0 %v2949_v60  ;;  %2649 = vmatpush3.bf16.msra.mxu1 %v2906_v47  ;;  %v2109_v29 = vpop.xlane.xlu1 %2108  ;;  %v1724_v47 = vand.u32 4294901760, %v1723_v42 }
  0x9e   :  { %2638 = vmatprep.subr.bf16.mxu0 %v2794_v8  ;;  %2656 = vmatprep.subr.bf16.mxu1 %v2794_v8  ;;  %v2110_v33 = vadd.f32 %v2109_v29, %v2106_v26 }
  0xa0   :  { %2421 = vmatmul.mubr.f32.vlgmr.msra.gmra.mrb[10].mxu0 %v697_v2  ;;  %2454 = vmatmul.mubr.f32.vlgmr.msra.gmra.mrb[12].mxu1 %v3004_v11  ;;  %2112 = vst.msk [vmem:[#allocation2] sm:$0xff] %vm35_vm4, %v2110_v33 }
  0xa1   :  { %2640 = vmatpush3.bf16.msra.mxu0 %v2864_v14  ;;  %2658 = vmatpush3.bf16.msra.mxu1 %v2864_v14 }
  0xa2   :  { %2641 = vmatprep.subr.bf16.mxu0 %v2794_v8  ;;  %2659 = vmatprep.subr.bf16.mxu1 %v2794_v8 }
  0xa3   :  { %2442 = vmatprep.mubr.msk.f32.mxu0 %vm2795_vm0, %v2796_v10  ;;  %2475 = vmatprep.mubr.msk.f32.mxu1 %vm2795_vm0, %v2796_v10 }
  0xa5   :  { %2643 = vmatpush3.bf16.msra.mxu0 %v2877_v21  ;;  %2661 = vmatpush3.bf16.msra.mxu1 %v2877_v21 }
  0xa6   :  { %2650 = vmatprep.subr.bf16.mxu0 %v2794_v8  ;;  %2668 = vmatprep.subr.bf16.mxu1 %v2794_v8 }
  0xa8   :  { %2443 = vmatmul.mubr.f32.vlgmr.msra.gmra.mrb[12].mxu0 %v1189_v35  ;;  %2476 = vmatmul.mubr.f32.vlgmr.msra.gmra.mrb[14].mxu1 %v1187_v23 }
  0xa9   :  { %2652 = vmatpush3.bf16.msra.mxu0 %v2915_v53  ;;  %2670 = vmatpush3.bf16.msra.mxu1 %v2864_v14  ;;  %v2117_v14 = vld [vmem:[#allocation2] sm:$0xff]  ;;  %v1692_v53 = vand.u32 4294901760, %v1691_v51 }
  0xaa   :  { %2653 = vmatprep.subr.bf16.mxu0 %v2794_v8  ;;  %2671 = vmatprep.subr.bf16.mxu1 %v2794_v8  ;;  %v2118_v43 = vmax.f32 %v2117_v14, 1.0 }
  0xab   :  { %2464 = vmatprep.mubr.msk.f32.mxu0 %vm2795_vm0, %v2796_v10  ;;  %2497 = vmatprep.mubr.msk.f32.mxu1 %vm2795_vm0, %v2796_v10 }
  0xac   :  { %2121 = vperm.xlu1 %2720, %v2118_v43  }
  0xad   :  { %2655 = vmatpush3.bf16.msra.mxu0 %v2931_v58  ;;  %2673 = vmatpush3.bf16.msra.mxu1 %v2877_v21  ;;  %v2684_v21 = vpack.c.bf16 %v1724_v47, %v1717_v46  ;;  %v2702_v58 = vpack.c.bf16 %v1722_v38, %v1715_v37 }
  0xae   :  { %2662 = vmatprep.subr.bf16.mxu0 %v2794_v8  ;;  %2680 = vmatprep.subr.bf16.mxu1 %v2794_v8 }
  0xb0   :  { %2465 = vmatmul.mubr.f32.vlgmr.msra.gmra.mrb[14].mxu0 %v3022_v16  ;;  %2498 = vmatmul.mubr.f32.vlgmr.msra.gmra.mrb[16].mxu1 %v3004_v11 }
  0xb1   :  { %2664 = vmatpush3.bf16.msra.mxu0 %v2941_v59  ;;  %2486 = vmatprep.mubr.msk.f32.mxu0 %vm2795_vm0, %v2796_v10 }
  0xb2   :  { %2665 = vmatprep.subr.bf16.mxu0 %v2794_v8  ;;  %2682 = vmatpush3.bf16.msra.mxu1 %v2681_v45 }
  0xb3   :  { %2683 = vmatprep.subr.bf16.mxu1 %v2794_v8  ;;  %2519 = vmatprep.mubr.msk.f32.mxu1 %vm2795_vm0, %v2796_v10 }
  0xb5   :  { %2667 = vmatpush3.bf16.msra.mxu0 %v2949_v60 }
  0xb6   :  { %2674 = vmatprep.subr.bf16.mxu0 %v2794_v8  ;;  %2685 = vmatpush3.bf16.msra.mxu1 %v2684_v21 }
  0xb7   :  { %2692 = vmatprep.subr.bf16.mxu1 %v2794_v8 }
  0xb8   :  { %2487 = vmatmul.mubr.f32.vlgmr.msra.gmra.mrb[16].mxu0 %v3004_v11 }
  0xb9   :  { %2676 = vmatpush3.bf16.msra.mxu0 %v2675_v50  ;;  %2508 = vmatprep.mubr.msk.f32.mxu0 %vm2795_vm0, %v2796_v10 }
  0xba   :  { %2677 = vmatprep.subr.bf16.mxu0 %v2794_v8  ;;  %2520 = vmatmul.mubr.msk.f32.vlgmr.msra.gmra.mrb[18].mxu1 %vm57_vm1, %v2921_v56 }
  0xbb   :  { %2694 = vmatpush3.bf16.msra.mxu1 %v2675_v50  ;;  %2541 = vmatprep.mubr.msk.f32.mxu1 %vm2795_vm0, %v2796_v10 }
  0xbc   :  { %2695 = vmatprep.subr.bf16.mxu1 %v2794_v8 }
  0xbd   :  { %2679 = vmatpush3.bf16.msra.mxu0 %v2678_v52 }
  0xbe   :  { %2686 = vmatprep.subr.bf16.mxu0 %v2794_v8 }
  0xbf   :  { %2697 = vmatpush3.bf16.msra.mxu1 %v2678_v52 }
  0xc0   :  { %2509 = vmatmul.mubr.f32.vlgmr.msra.gmra.mrb[18].mxu0 %v1692_v53  ;;  %2704 = vmatprep.subr.bf16.mxu1 %v2794_v8 }
  0xc1   :  { %2688 = vmatpush3.bf16.msra.mxu0 %v2687_v54  ;;  %2530 = vmatprep.mubr.msk.f32.mxu0 %vm2795_vm0, %v2796_v10 }
  0xc2   :  { %2689 = vmatprep.subr.bf16.mxu0 %v2794_v8  ;;  %2542 = vmatmul.mubr.f32.vlgmr.msra.gmra.mrb[20].mxu1 %v1690_v49 }
  0xc3   :  { %2706 = vmatpush3.bf16.msra.mxu1 %v2675_v50  ;;  %2563 = vmatprep.mubr.msk.f32.mxu1 %vm2795_vm0, %v2796_v10 }
  0xc4   :  { %2707 = vmatprep.subr.bf16.mxu1 %v2794_v8 }
  0xc5   :  { %2691 = vmatpush3.bf16.msra.mxu0 %v2690_v55 }
  0xc6   :  { %2698 = vmatprep.subr.bf16.mxu0 %v2794_v8 }
  0xc7   :  { %2709 = vmatpush3.bf16.msra.mxu1 %v2678_v52 }
  0xc8   :  { %2531 = vmatmul.mubr.f32.vlgmr.msra.gmra.mrb[20].mxu0 %v1689_v48 }
  0xc9   :  { %2700 = vmatpush3.bf16.msra.mxu0 %v2699_v57  ;;  %2552 = vmatprep.mubr.msk.f32.mxu0 %vm2795_vm0, %v2796_v10 }
  0xca   :  { %2701 = vmatprep.subr.bf16.mxu0 %v2794_v8  ;;  %2564 = vmatmul.mubr.msk.f32.vlgmr.msra.gmra.mrb[22].mxu1 %vm57_vm1, %v2921_v56 }
  0xcd   :  { %2703 = vmatpush3.bf16.msra.mxu0 %v2702_v58 }
  0xd0   :  { %2553 = vmatmul.mubr.msk.f32.vlgmr.msra.gmra.mrb[22].mxu0 %vm57_vm1, %v2921_v56 }
  0xe8   :  { %v136_v59 = vpop.f32.mrb[0].mxu0  ;;  %v227_v61 = vpop.f32.mrb[0].mxu1 }
  0xe9   :  { %v2312_v60 = vpop.f32.mrb[1].mxu0  ;;  %v228_v62 = vadd.f32 %v227_v61, %v136_v59  ;;  %v2323_v63 = vpop.f32.mrb[1].mxu1 }
  0xf0   :  { %v307_v8 = vpop.f32.mrb[2].mxu0  ;;  %v384_v1 = vpop.f32.mrb[2].mxu1 }
  0xf1   :  { %v308_v0 = vadd.f32 %v307_v8, %v228_v62  ;;  %v2334_v2 = vpop.f32.mrb[3].mxu0  ;;  %v2345_v56 = vpop.f32.mrb[3].mxu1 }
  0xf3   :  { %v385_v3 = vadd.f32 %v384_v1, %v308_v0 }
  0xf8   :  { %v467_v4 = vpop.f32.mrb[4].mxu0  ;;  %v542_v6 = vpop.f32.mrb[4].mxu1 }
  0xf9   :  { %v468_v5 = vadd.f32 %v467_v4, %v385_v3  ;;  %v2356_v7 = vpop.f32.mrb[5].mxu0  ;;  %v2367_v11 = vpop.f32.mrb[5].mxu1 }
  0xfb   :  { %v543_v12 = vadd.f32 %v542_v6, %v468_v5 }
  0xfd   :  { %v546_v13 = vadd.f32 %v543_v12, %v56_v9 }
  0xff   :  { %548 = vst.msk [vmem:[#allocation3] sm:$0x3] %vm27_vm6, %v546_v13 }
 0x100   :  { %2735 = shalt.err (!%p2732_p4)
}
 0x101   :  { %s2736_s24 = scalar_lea.hbm %s3233_s4, 32 }
 0x102   :  { %p2737_p5 = scmp.ne.s32.totalorder %s3233_s4, %s2736_s24  ;;  %p2740_p6 = scmp.lt.u32.totalorder %s2736_s24, %s3233_s4 }
 0x104   :  { %p2742_p7 = pnand %p2740_p6, %p2737_p5 }
 0x106   :  { %2745 = shalt.err (!%p2742_p7)
}
 0x107   :  { %2136 = dma.vmem_to_hbm [thread:$0]  %s2134_s20, 32, %s3233_s4, [#allocation4]   ;;  %v553_v10 = vpop.xlane.xlu0 %552  ;;  %v549_v15 = vld [vmem:[%s3234_s5] sm:$0x3]  ;;  %v623_v36 = vld [vmem:[#allocation5] sm:$0xff]  ;;  %v624_v51 = vld [vmem:[#allocation5 + $0x8] sm:$0xff] }
 0x108   :  { %v554_v16 = vadd.f32 %v553_v10, %v549_v15  ;;  %s2800_s4 = smov [#allocation5]  }
 0x10a   :  { %556 = vst.msk [vmem:[%s3234_s5] sm:$0x3] %vm29_vm8, %v554_v16  ;;  %s2144_s5 = sshll.u32 %s2800_s4, 4  ;;  %s2145_s5 = int_to_ptr.vmem [resolvable:$true] %s2144_s5 }
 0x10b   :  { %s2746_s10 = scalar_lea.vmem %s2145_s5, 256  ;;  %p2751_p9 = scmp.lt.s32.totalorder %s2145_s5, %s2145_s5 }
 0x10c   :  { %p2747_p8 = scmp.ne.s32.totalorder %s2145_s5, %s2746_s10  ;;  %p2752_p10 = scmp.lt.s32.totalorder %s2746_s10, %s2746_s10 }
 0x10e   :  { %p2753_p11 = por %p2752_p10, %p2751_p9 }
 0x110   :  { %p2754_p12 = pnand %p2753_p11, %p2747_p8 }
 0x15b   :  { %v794_v17 = vpop.f32.mrb[6].mxu1 }
 0x15c   :  { %v2389_v18 = vpop.f32.mrb[7].mxu1 }
 0x163   :  { %v951_v19 = vpop.f32.mrb[8].mxu1  ;;  %v703_v20 = vpop.f32.mrb[6].mxu0 }
 0x164   :  { %v795_v22 = vadd.f32 %v794_v17, %v703_v20  ;;  %v2411_v23 = vpop.f32.mrb[9].mxu1  ;;  %v2378_v24 = vpop.f32.mrb[7].mxu0 }
 0x16b   :  { %v874_v25 = vpop.f32.mrb[8].mxu0  ;;  %v1109_v26 = vpop.f32.mrb[10].mxu1 }
 0x16c   :  { %v875_v27 = vadd.f32 %v874_v25, %v795_v22  ;;  %v2400_v28 = vpop.f32.mrb[9].mxu0  ;;  %v2433_v29 = vpop.f32.mrb[11].mxu1 }
 0x16e   :  { %v952_v30 = vadd.f32 %v951_v19, %v875_v27 }
 0x173   :  { %v1034_v31 = vpop.f32.mrb[10].mxu0  ;;  %v1282_v32 = vpop.f32.mrb[12].mxu1 }
 0x174   :  { %v1035_v33 = vadd.f32 %v1034_v31, %v952_v30  ;;  %v2422_v34 = vpop.f32.mrb[11].mxu0  ;;  %v2455_v35 = vpop.f32.mrb[13].mxu1 }
 0x176   :  { %v1110_v37 = vadd.f32 %v1109_v26, %v1035_v33 }
 0x178   :  { %v1601_v38 = vadd.f32 %v1110_v37, %v623_v36 }
 0x17a   :  { %1604 = vst.msk [vmem:[#allocation5] sm:$0xff] %vm31_vm7, %v1601_v38 }
 0x17b   :  { %v1191_v39 = vpop.f32.mrb[12].mxu0  ;;  %v1439_v40 = vpop.f32.mrb[14].mxu1 }
 0x17c   :  { %v1283_v41 = vadd.f32 %v1282_v32, %v1191_v39  ;;  %v2444_v42 = vpop.f32.mrb[13].mxu0  ;;  %v2477_v14 = vpop.f32.mrb[15].mxu1 }
 0x183   :  { %v1362_v43 = vpop.f32.mrb[14].mxu0  ;;  %v1597_v44 = vpop.f32.mrb[16].mxu1 }
 0x184   :  { %v1363_v45 = vadd.f32 %v1362_v43, %v1283_v41  ;;  %v2466_v46 = vpop.f32.mrb[15].mxu0  ;;  %v2499_v47 = vpop.f32.mrb[17].mxu1 }
 0x186   :  { %v1440_v48 = vadd.f32 %v1439_v40, %v1363_v45 }
 0x18b   :  { %v1522_v21 = vpop.f32.mrb[16].mxu0 }
 0x18c   :  { %v1523_v49 = vadd.f32 %v1522_v21, %v1440_v48  ;;  %v2488_v50 = vpop.f32.mrb[17].mxu0 }
 0x18d   :  { %v1785_v52 = vpop.f32.mrb[18].mxu1 }
 0x18e   :  { %v1598_v53 = vadd.f32 %v1597_v44, %v1523_v49  ;;  %v2521_v54 = vpop.f32.mrb[19].mxu1 }
 0x190   :  { %v1602_v55 = vadd.f32 %v1598_v53, %v624_v51 }
 0x192   :  { %1605 = vst.msk [vmem:[#allocation5 + $0x8] sm:$0xff] %vm31_vm7, %v1602_v55 }
 0x193   :  { %v1694_v57 = vpop.f32.mrb[18].mxu0 }
 0x194   :  { %2757 = shalt.err (!%p2754_p12)
}
 0x195   :  { %s2758_s12 = scalar_lea.hbm %s3235_s6, 256 }
 0x196   :  { %p2759_p13 = scmp.ne.s32.totalorder %s3235_s6, %s2758_s12  ;;  %p2762_p0 = scmp.lt.u32.totalorder %s2758_s12, %s3235_s6 }
 0x198   :  { %p2764_p1 = pnand %p2762_p0, %p2759_p13 }
 0x19a   :  { %2767 = shalt.err (!%p2764_p1)
}
 0x19b   :  { %s2801_s17 = smov 128   ;;  %s2802_s1 = smov 8   ;;  %v2510_v58 = vpop.f32.mrb[19].mxu0  ;;  %v1786_v59 = vadd.f32 %v1785_v52, %v1694_v57  ;;  %v1942_v60 = vpop.f32.mrb[20].mxu1  ;;  %v1615_v6 = vld [vmem:[#allocation7] sm:$0xff] }
 0x19c   :  { %2150 = dma.vmem_to_hbm [thread:$0]  %s2145_s5, 256, %s3235_s6, [#allocation6], %s2801_s17, %s2801_s17, %s2802_s1   ;;  %v2543_v61 = vpop.f32.mrb[21].mxu1  ;;  %v1865_v62 = vpop.f32.mrb[20].mxu0 }
 0x19d   :  { %v1866_v63 = vadd.f32 %v1865_v62, %v1786_v59  ;;  %v2532_v8 = vpop.f32.mrb[21].mxu0  ;;  %v2100_v0 = vpop.f32.mrb[22].mxu1  ;;  %s2803_s6 = smov [#allocation7]  }
 0x19e   :  { %v2565_v2 = vpop.f32.mrb[23].mxu1  ;;  %v2122_v56 = vpop.permute.xlu1 %2121  ;;  %s2157_s20 = sshll.u32 %s2803_s6, 4  ;;  %s2158_s20 = int_to_ptr.vmem [resolvable:$true] %s2157_s20 }
 0x19f   :  { %v1943_v1 = vadd.f32 %v1942_v60, %v1866_v63  ;;  %2722 = vrcp.f32 %v2122_v56  ;;  %s2768_s21 = scalar_lea.vmem %s2158_s20, 128  ;;  %p2773_p3 = scmp.lt.s32.totalorder %s2158_s20, %s2158_s20 }
 0x1a0   :  { %p2769_p2 = scmp.ne.s32.totalorder %s2158_s20, %s2768_s21  ;;  %p2774_p4 = scmp.lt.s32.totalorder %s2768_s21, %s2768_s21 }
 0x1a2   :  { %p2775_p5 = por %p2774_p4, %p2773_p3 }
 0x1a3   :  { %v2025_v3 = vpop.f32.mrb[22].mxu0 }
 0x1a4   :  { %v2026_v4 = vadd.f32 %v2025_v3, %v1943_v1  ;;  %v2554_v5 = vpop.f32.mrb[23].mxu0  ;;  %p2776_p6 = pnand %p2775_p5, %p2769_p2 }
 0x1a6   :  { %v2101_v7 = vadd.f32 %v2100_v0, %v2026_v4 }
 0x1a8   :  { %v2104_v9 = vadd.f32 %v2101_v7, %v1615_v6 }
 0x1a9   :  { %v2723_v11 = vpop.eup %2722 }
 0x1aa   :  { %2105 = vst.msk [vmem:[#allocation7] sm:$0xff] %vm31_vm7, %v2104_v9 }
 0x1b1   :  { %v2116_v12 = vld [vmem:[#allocation7] sm:$0xff] }
 0x1b2   :  { %v2125_v13 = vmul.f32 %v2723_v11, %v2116_v12 }
 0x1b4   :  { %2126 = vst.msk [vmem:[#allocation7] sm:$0xff] %vm31_vm7, %v2125_v13 }
 0x1b5   :  { %2779 = shalt.err (!%p2776_p6)
}
 0x1b6   :  { %s2780_s24 = scalar_lea.hbm %s3236_s7, 128 }
 0x1b7   :  { %p2781_p7 = scmp.ne.s32.totalorder %s3236_s7, %s2780_s24  ;;  %p2784_p8 = scmp.lt.u32.totalorder %s2780_s24, %s3236_s7 }
 0x1b9   :  { %p2786_p9 = pnand %p2784_p8, %p2781_p7 }
 0x1bb   :  { %2789 = shalt.err (!%p2786_p9)
}
 0x1bc   :  { %2160 = dma.vmem_to_hbm [thread:$0]  %s2158_s20, 128, %s3236_s7, [#allocation6]  }
 0x1bd   :  { %2790 = dma.done.wait [#allocation4], 32  }
 0x1be   :  { %2791 = vsyncadd [#allocation4], 4294967264 }
 0x1bf   :  { %2792 = dma.done.wait [#allocation6], 384  }
 0x1c0   :  { %2793 = vsyncadd [#allocation6], 4294966912 }
 0x1c1   :  { %2172 = vsyncpa [#allocation4], 1 }
 0x1c2   :  { %2173 = vsyncpa [#allocation6], 1 }

</bundles_post_ra>
